<compile_context>
chip_gen: v7x
topology: tpu7x:2x2x1
jax: 0.10.0
libtpu: 0.0.40
codegen_flags: <defaults>
</compile_context>

<pallas_src>
import jax
import jax.numpy as jnp
import numpy as np
from jax.experimental import pallas as pl
from jax.experimental.pallas import tpu as pltpu


def gat_head_kernel(b_ref, qi_ref, qj_ref, g_ref, h_ref, w_ref, out_ref):
    """One grid step scores TQ queries (lane-dense) against the shared graph."""
    N, D = h_ref.shape
    E = g_ref.shape[0]
    TQ = qi_ref.shape[1]

    b = b_ref[0]                       # f32 scalar (SMEM)
    qi = qi_ref[...]                   # (1, TQ) int32: query node i per lane
    qj = qj_ref[...]                   # (1, TQ) int32: query node j per lane

    # 1. Node scores, once per query block: s1[n] = h[n]·w1, s2[n] = h[n]·w2.
    s_all = jnp.dot(h_ref[...], w_ref[...], preferred_element_type=jnp.float32)  # (N, 2)
    s1_col = s_all[:, 0:1]             # (N, 1)
    s2_col = s_all[:, 1:2]             # (N, 1)

    # 2. Per-query gathers si = s1[qi], sj = s2[qj]  -> lane-dense (1, TQ) rows.
    iota_nq = jax.lax.broadcasted_iota(jnp.int32, (N, TQ), 0)
    si = jnp.sum(jnp.where(iota_nq == qi, s1_col, 0.0), axis=0, keepdims=True)   # (1, TQ)
    sj = jnp.sum(jnp.where(iota_nq == qj, s2_col, 0.0), axis=0, keepdims=True)   # (1, TQ)

    # 3. Per-edge endpoint scores via bounded one-hot MXU gathers (query-invariant).
    src = g_ref[:, 0:1]                # (E, 1) int32
    dst = g_ref[:, 1:2]                # (E, 1) int32
    iota_en = jax.lax.broadcasted_iota(jnp.int32, (E, N), 1)
    oh_src = (iota_en == src).astype(jnp.float32)                                 # (E, N)
    oh_dst = (iota_en == dst).astype(jnp.float32)                                 # (E, N)
    s2_src = jnp.dot(oh_src, s2_col, preferred_element_type=jnp.float32)          # (E, 1)
    s2_dst = jnp.dot(oh_dst, s2_col, preferred_element_type=jnp.float32)          # (E, 1)
    # TODO(synk): tile E with an extra "arbitrary" grid axis once
    # E * max(N, TQ) * 4B approaches the scoped VMEM limit (v7x: 64 MiB phys).

    # 4. Edge x query cross: edges on sublanes, queries on lanes (E, TQ).
    is_src = src == qi                                  # edge starts at query node i
    touches = jnp.logical_or(is_src, dst == qi)         # edge incident to node i
    s2_nbr = jnp.where(is_src, s2_dst, s2_src)          # (E, TQ), "elif" neighbor pick

    def lrelu(x):
        return jnp.where(x >= 0, x, 0.2 * x)

    edge_sc = jnp.where(touches, lrelu(si + s2_nbr + b), 0.0)                     # (E, TQ)

    # 5. Reduce over edges on the MXU: denom[q] = sum_e edge_sc[e, q].
    ones_e = jnp.ones((1, E), dtype=jnp.float32)
    denom = jnp.dot(ones_e, edge_sc, preferred_element_type=jnp.float32)          # (1, TQ)

    e_ij = lrelu(si + sj + b)                                                     # (1, TQ)
    # Exact divide kept (pl.reciprocal(approx=True) perturbs low-order bits and
    # would require loosening the numeric check); the divide is O(TQ) VPU work.
    out_ref[...] = e_ij / denom


_TQ = 128   # queries per grid block = lane width of the output slab


def gat_head_forward_batched(g, h, qi, qj, weight, bias):
    """Score Q queries (qi[q], qj[q]) on the shared graph with ONE pallas_call."""
    N, D = h.shape
    E = g.shape[0]
    Q = int(qi.shape[0])
    q_pad = pl.cdiv(Q, _TQ) * _TQ

    qi_p = jnp.zeros((1, q_pad), jnp.int32).at[0, :Q].set(jnp.asarray(qi, jnp.int32))
    qj_p = jnp.zeros((1, q_pad), jnp.int32).at[0, :Q].set(jnp.asarray(qj, jnp.int32))
    # Fuse the two halves of attnn.weight into one (D, 2) tile: col0 = w1, col1 = w2.
    w = jnp.stack([weight[0, :D], weight[0, D:]], axis=1).astype(jnp.float32)
    b = jnp.asarray(bias, jnp.float32).reshape(1)
    # TODO(synk): cast h / w to bfloat16 for the matmul once N*D is non-trivial
    # (2x MXU rate + half the DMA bytes on v6e/v7x); kept f32 here so the tight
    # numeric self-check against the f64 reference holds at these tiny shapes.

    out = pl.pallas_call(
        gat_head_kernel,
        out_shape=jax.ShapeDtypeStruct((1, q_pad), jnp.float32),
        grid=(q_pad // _TQ,),
        in_specs=[
            pl.BlockSpec(memory_space=pltpu.MemorySpace.SMEM),     # bias scalar
            pl.BlockSpec((1, _TQ), lambda q: (0, q)),              # qi query block
            pl.BlockSpec((1, _TQ), lambda q: (0, q)),              # qj query block
            pl.BlockSpec((E, 2), lambda q: (0, 0)),                # edge list (resident)
            pl.BlockSpec((N, D), lambda q: (0, 0)),                # node features (resident)
            pl.BlockSpec((D, 2), lambda q: (0, 0)),                # fused weight
        ],
        out_specs=pl.BlockSpec((1, _TQ), lambda q: (0, q)),        # lane-dense output row
        compiler_params=pltpu.CompilerParams(
            dimension_semantics=("parallel",)),                    # 2nd TC on v7x
    )(b, qi_p, qj_p, jnp.asarray(g, jnp.int32), jnp.asarray(h, jnp.float32), w)
    return out[0, :Q]


def gat_head_forward(g, h, i, j, weight, bias):
    """Single-query API parity with the PyTorch forward (returns shape (1,))."""
    out = gat_head_forward_batched(
        g, h, jnp.asarray([i], jnp.int32), jnp.asarray([j], jnp.int32), weight, bias)
    return out.reshape(1)


def reference_forward(g, h, i, j, weight, bias):
    """Float64 numpy reference mirroring the PyTorch loop (eval mode)."""
    h64 = np.asarray(h, np.float64)
    w64 = np.asarray(weight, np.float64)[0]
    b64 = float(np.asarray(bias, np.float64)[0])
    D = h64.shape[1]

    def score(a, c):
        v = h64[a] @ w64[:D] + h64[c] @ w64[D:] + b64
        return v if v >= 0 else 0.2 * v

    s = 0.0
    for p0, p1 in np.asarray(g):
        if p0 == i:
            s += score(i, p1)
        elif p1 == i:
            s += score(i, p0)
    return np.array([score(i, j) / s], np.float64)


if __name__ == "__main__":
    in_dim = 32     # D
    n_nodes = 8     # N
    key = jax.random.PRNGKey(0)
    k_h, k_w, k_b = jax.random.split(key, 3)

    # Node features.
    h = jax.random.normal(k_h, (n_nodes, in_dim), dtype=jnp.float32)

    # Deterministic init matching nn.Linear(2*in_dim, 1) + xavier_uniform_ weight.
    fan_in, fan_out = 2 * in_dim, 1
    xavier_bound = float(np.sqrt(6.0 / (fan_in + fan_out)))
    weight = jax.random.uniform(k_w, (1, 2 * in_dim), dtype=jnp.float32,
                                minval=-xavier_bound, maxval=xavier_bound)
    bias_bound = 1.0 / float(np.sqrt(fan_in))
    bias = jax.random.uniform(k_b, (1,), dtype=jnp.float32,
                              minval=-bias_bound, maxval=bias_bound)

    # Edge list (E=8 pairs).
    g = jnp.array([[0, 1],
                   [2, 0],
                   [0, 3],
                   [4, 5],
                   [5, 0],
                   [6, 7],
                   [0, 6],
                   [3, 2]], dtype=jnp.int32)

    # Batched queries: every (i, j) pair is scored by ONE kernel launch.
    queries = [(0, 1), (3, 2), (5, 4), (6, 7)]
    qi = jnp.asarray([q[0] for q in queries], jnp.int32)
    qj = jnp.asarray([q[1] for q in queries], jnp.int32)

    out = gat_head_forward_batched(g, h, qi, qj, weight, bias)
    out = jax.block_until_ready(out)

    ref = np.concatenate([reference_forward(g, h, i, j, weight, bias)
                          for (i, j) in queries])
    assert np.allclose(np.asarray(out, np.float64), ref, rtol=5e-4, atol=1e-5), (out, ref)

    # Single-query path (PyTorch forward signature, shape (1,)).
    single = jax.block_until_ready(gat_head_forward(g, h, 0, 1, weight, bias))
    ref0 = reference_forward(g, h, 0, 1, weight, bias)
    assert np.allclose(np.asarray(single, np.float64), ref0, rtol=5e-4, atol=1e-5), (single, ref0)

    print("KERNEL_OK")
</pallas_src>

<mosaic_0001>
module attributes {stable_mosaic.version = 11 : i64} {
  func.func @gat_head_kernel(%arg0: i32, %arg1: memref<1xf32, #tpu.memory_space<smem>>, %arg2: memref<1x128xi32, #tpu.memory_space<vmem>>, %arg3: memref<1x128xi32, #tpu.memory_space<vmem>>, %arg4: memref<8x2xi32, #tpu.memory_space<vmem>>, %arg5: memref<8x32xf32, #tpu.memory_space<vmem>>, %arg6: memref<32x2xf32, #tpu.memory_space<vmem>>, %arg7: memref<1x128xf32, #tpu.memory_space<vmem>>) attributes {dimension_semantics = [#tpu.dimension_semantics<parallel>], iteration_bounds = array<i64: 1>, scalar_prefetch = 0 : i64, scratch_operands = 0 : i64, tpu.core_type = #tpu.core_type<tc>, window_params = [{transform_indices = @transform_0, window_bounds = array<i64: 1>}, {transform_indices = @transform_1, window_bounds = array<i64: 1, 128>}, {transform_indices = @transform_2, window_bounds = array<i64: 1, 128>}, {pipeline_mode = #tpu.pipeline_mode<synchronous>, transform_indices = @transform_3, window_bounds = array<i64: 8, 2>}, {pipeline_mode = #tpu.pipeline_mode<synchronous>, transform_indices = @transform_4, window_bounds = array<i64: 8, 32>}, {pipeline_mode = #tpu.pipeline_mode<synchronous>, transform_indices = @transform_5, window_bounds = array<i64: 32, 2>}, {transform_indices = @transform_6, window_bounds = array<i64: 1, 128>}]} {
    %c0 = arith.constant 0 : index
    %0 = memref.load %arg1[%c0] : memref<1xf32, #tpu.memory_space<smem>>
    %c0_0 = arith.constant 0 : index
    %c0_1 = arith.constant 0 : index
    %1 = vector.load %arg2[%c0_0, %c0_1] : memref<1x128xi32, #tpu.memory_space<vmem>>, vector<1x128xi32>
    %c0_2 = arith.constant 0 : index
    %c0_3 = arith.constant 0 : index
    %2 = vector.load %arg3[%c0_2, %c0_3] : memref<1x128xi32, #tpu.memory_space<vmem>>, vector<1x128xi32>
    %c0_4 = arith.constant 0 : index
    %c0_5 = arith.constant 0 : index
    %3 = vector.load %arg5[%c0_4, %c0_5] : memref<8x32xf32, #tpu.memory_space<vmem>>, vector<8x32xf32>
    %c0_6 = arith.constant 0 : index
    %c0_7 = arith.constant 0 : index
    %4 = vector.load %arg6[%c0_6, %c0_7] : memref<32x2xf32, #tpu.memory_space<vmem>>, vector<32x2xf32>
    %cst = arith.constant dense<0.000000e+00> : vector<8x2xf32>
    %5 = tpu.matmul %3, %4, %cst {dimension_numbers = #tpu.dot_dimension_numbers<[1], [0], [0], [1], [0, 0, 1, 1], [], []>} : vector<8x32xf32>, vector<32x2xf32>, vector<8x2xf32> -> vector<8x2xf32>
    %6 = vector.extract_strided_slice %5 {offsets = [0, 0], sizes = [8, 1], strides = [1, 1]} : vector<8x2xf32> to vector<8x1xf32>
    %7 = vector.extract_strided_slice %5 {offsets = [0, 1], sizes = [8, 1], strides = [1, 1]} : vector<8x2xf32> to vector<8x1xf32>
    %8 = tpu.iota {dimensions = array<i32: 0>} : vector<8x128xi32>
    %9 = vector.broadcast %1 : vector<1x128xi32> to vector<8x128xi32>
    %10 = arith.cmpi eq, %8, %9 : vector<8x128xi32>
    %cst_8 = arith.constant 0.000000e+00 : f32
    %11 = vector.shape_cast %6 : vector<8x1xf32> to vector<8x1xf32>
    %12 = vector.broadcast %11 : vector<8x1xf32> to vector<8x128xf32>
    %13 = vector.broadcast %cst_8 : f32 to vector<8x128xf32>
    %14 = arith.select %10, %12, %13 : vector<8x128xi1>, vector<8x128xf32>
    %cst_9 = arith.constant dense<0.000000e+00> : vector<128xf32>
    %15 = vector.multi_reduction <add>, %14, %cst_9 [0] : vector<8x128xf32> to vector<128xf32>
    %16 = vector.shape_cast %15 : vector<128xf32> to vector<1x128xf32>
    %17 = vector.broadcast %2 : vector<1x128xi32> to vector<8x128xi32>
    %18 = arith.cmpi eq, %8, %17 : vector<8x128xi32>
    %cst_10 = arith.constant 0.000000e+00 : f32
    %19 = vector.shape_cast %7 : vector<8x1xf32> to vector<8x1xf32>
    %20 = vector.broadcast %19 : vector<8x1xf32> to vector<8x128xf32>
    %21 = vector.broadcast %cst_10 : f32 to vector<8x128xf32>
    %22 = arith.select %18, %20, %21 : vector<8x128xi1>, vector<8x128xf32>
    %cst_11 = arith.constant dense<0.000000e+00> : vector<128xf32>
    %23 = vector.multi_reduction <add>, %22, %cst_11 [0] : vector<8x128xf32> to vector<128xf32>
    %24 = vector.shape_cast %23 : vector<128xf32> to vector<1x128xf32>
    %c0_12 = arith.constant 0 : index
    %c0_13 = arith.constant 0 : index
    %25 = vector.load %arg4[%c0_12, %c0_13] : memref<8x2xi32, #tpu.memory_space<vmem>>, vector<8x1xi32>
    %c0_14 = arith.constant 0 : index
    %c1 = arith.constant 1 : index
    %26 = vector.load %arg4[%c0_14, %c1] : memref<8x2xi32, #tpu.memory_space<vmem>>, vector<8x1xi32>
    %27 = tpu.iota {dimensions = array<i32: 1>} : vector<8x8xi32>
    %28 = vector.broadcast %25 : vector<8x1xi32> to vector<8x8xi32>
    %29 = arith.cmpi eq, %27, %28 : vector<8x8xi32>
    %30 = arith.extui %29 : vector<8x8xi1> to vector<8x8xi32>
    %31 = arith.sitofp %30 : vector<8x8xi32> to vector<8x8xf32>
    %32 = vector.broadcast %26 : vector<8x1xi32> to vector<8x8xi32>
    %33 = arith.cmpi eq, %27, %32 : vector<8x8xi32>
    %34 = arith.extui %33 : vector<8x8xi1> to vector<8x8xi32>
    %35 = arith.sitofp %34 : vector<8x8xi32> to vector<8x8xf32>
    %cst_15 = arith.constant dense<0.000000e+00> : vector<8x1xf32>
    %36 = tpu.matmul %31, %7, %cst_15 {dimension_numbers = #tpu.dot_dimension_numbers<[1], [0], [0], [1], [0, 0, 1, 1], [], []>} : vector<8x8xf32>, vector<8x1xf32>, vector<8x1xf32> -> vector<8x1xf32>
    %cst_16 = arith.constant dense<0.000000e+00> : vector<8x1xf32>
    %37 = tpu.matmul %35, %7, %cst_16 {dimension_numbers = #tpu.dot_dimension_numbers<[1], [0], [0], [1], [0, 0, 1, 1], [], []>} : vector<8x8xf32>, vector<8x1xf32>, vector<8x1xf32> -> vector<8x1xf32>
    %38 = vector.broadcast %25 : vector<8x1xi32> to vector<8x128xi32>
    %39 = vector.broadcast %1 : vector<1x128xi32> to vector<8x128xi32>
    %40 = arith.cmpi eq, %38, %39 : vector<8x128xi32>
    %41 = vector.broadcast %26 : vector<8x1xi32> to vector<8x128xi32>
    %42 = vector.broadcast %1 : vector<1x128xi32> to vector<8x128xi32>
    %43 = arith.cmpi eq, %41, %42 : vector<8x128xi32>
    %44 = arith.ori %40, %43 : vector<8x128xi1>
    %45 = vector.shape_cast %37 : vector<8x1xf32> to vector<8x1xf32>
    %46 = vector.broadcast %45 : vector<8x1xf32> to vector<8x128xf32>
    %47 = vector.shape_cast %36 : vector<8x1xf32> to vector<8x1xf32>
    %48 = vector.broadcast %47 : vector<8x1xf32> to vector<8x128xf32>
    %49 = arith.select %40, %46, %48 : vector<8x128xi1>, vector<8x128xf32>
    %50 = vector.broadcast %16 : vector<1x128xf32> to vector<8x128xf32>
    %51 = arith.addf %50, %49 : vector<8x128xf32>
    %52 = vector.broadcast %0 : f32 to vector<8x128xf32>
    %53 = arith.addf %51, %52 : vector<8x128xf32>
    %cst_17 = arith.constant 0.000000e+00 : f32
    %54 = vector.broadcast %cst_17 : f32 to vector<8x128xf32>
    %55 = arith.cmpf oge, %53, %54 : vector<8x128xf32>
    %cst_18 = arith.constant 2.000000e-01 : f32
    %56 = vector.broadcast %cst_18 : f32 to vector<8x128xf32>
    %57 = arith.mulf %56, %53 : vector<8x128xf32>
    %58 = arith.select %55, %53, %57 : vector<8x128xi1>, vector<8x128xf32>
    %cst_19 = arith.constant 0.000000e+00 : f32
    %59 = vector.broadcast %cst_19 : f32 to vector<8x128xf32>
    %60 = arith.select %44, %58, %59 : vector<8x128xi1>, vector<8x128xf32>
    %cst_20 = arith.constant 1.000000e+00 : f32
    %61 = vector.broadcast %cst_20 : f32 to vector<1x8xf32>
    %cst_21 = arith.constant dense<0.000000e+00> : vector<1x128xf32>
    %62 = tpu.matmul %61, %60, %cst_21 {dimension_numbers = #tpu.dot_dimension_numbers<[1], [0], [0], [1], [0, 0, 1, 1], [], []>} : vector<1x8xf32>, vector<8x128xf32>, vector<1x128xf32> -> vector<1x128xf32>
    %63 = arith.addf %16, %24 : vector<1x128xf32>
    %64 = vector.broadcast %0 : f32 to vector<1x128xf32>
    %65 = arith.addf %63, %64 : vector<1x128xf32>
    %cst_22 = arith.constant 0.000000e+00 : f32
    %66 = vector.broadcast %cst_22 : f32 to vector<1x128xf32>
    %67 = arith.cmpf oge, %65, %66 : vector<1x128xf32>
    %cst_23 = arith.constant 2.000000e-01 : f32
    %68 = vector.broadcast %cst_23 : f32 to vector<1x128xf32>
    %69 = arith.mulf %68, %65 : vector<1x128xf32>
    %70 = arith.select %67, %65, %69 : vector<1x128xi1>, vector<1x128xf32>
    %71 = arith.divf %70, %62 : vector<1x128xf32>
    %c0_24 = arith.constant 0 : index
    %c0_25 = arith.constant 0 : index
    %72 = vector.load %arg7[%c0_24, %c0_25] : memref<1x128xf32, #tpu.memory_space<vmem>>, vector<1x128xf32>
    tpu.vector_store %arg7[%c0_24, %c0_25], %71 {strides = array<i32>} : memref<1x128xf32, #tpu.memory_space<vmem>>, vector<1x128xf32>,
    return
  }
  func.func @transform_0(%arg0: i32) -> i32 {
    %c0_i32 = arith.constant 0 : i32
    %c0_i32_0 = arith.constant 0 : i32
    return %c0_i32 : i32
  }
  func.func @transform_1(%arg0: i32) -> (i32, i32) {
    %c0_i32 = arith.constant 0 : i32
    %c0_i32_0 = arith.constant 0 : i32
    return %c0_i32, %arg0 : i32, i32
  }
  func.func @transform_2(%arg0: i32) -> (i32, i32) {
    %c0_i32 = arith.constant 0 : i32
    %c0_i32_0 = arith.constant 0 : i32
    return %c0_i32, %arg0 : i32, i32
  }
  func.func @transform_3(%arg0: i32) -> (i32, i32) {
    %c0_i32 = arith.constant 0 : i32
    %c0_i32_0 = arith.constant 0 : i32
    %c0_i32_1 = arith.constant 0 : i32
    return %c0_i32, %c0_i32_0 : i32, i32
  }
  func.func @transform_4(%arg0: i32) -> (i32, i32) {
    %c0_i32 = arith.constant 0 : i32
    %c0_i32_0 = arith.constant 0 : i32
    %c0_i32_1 = arith.constant 0 : i32
    return %c0_i32, %c0_i32_0 : i32, i32
  }
  func.func @transform_5(%arg0: i32) -> (i32, i32) {
    %c0_i32 = arith.constant 0 : i32
    %c0_i32_0 = arith.constant 0 : i32
    %c0_i32_1 = arith.constant 0 : i32
    return %c0_i32, %c0_i32_0 : i32, i32
  }
  func.func @transform_6(%arg0: i32) -> (i32, i32) {
    %c0_i32 = arith.constant 0 : i32
    %c0_i32_0 = arith.constant 0 : i32
    return %c0_i32, %arg0 : i32, i32
  }
}

</mosaic_0001>

<bundles_post_ra>
// kernel: tpu_custom_call.1
= control target key start
LH: loop header
LB: loop body
LE: loop exit
PB: predicated region body
PF: predicated region fallthrough
CT: control target
= control target key end

     0   :  { %v514_v3 = vmov 0.0|0.0   ;;  %vm515_vm0 = vmmov 0   ;;  %v516_v6 = vmov 0.0   ;;  %v517_v8 = vmov 0   ;;  %s605_s0 = inlined_call_operand.<no memory space> [shape: f32[1], index: 0, kind: input, shape index: {}]   ;;  %s606_s1 = inlined_call_operand.vmem [shape: s32[1,128], index: 1, kind: input, shape index: {}]   ;;  %s607_s2 = inlined_call_operand.vmem [shape: s32[1,128], index: 2, kind: input, shape index: {}]   ;;  %s608_s3 = inlined_call_operand.vmem [shape: s32[8,2], index: 3, kind: input, shape index: {}]   ;;  %s609_s4 = inlined_call_operand.vmem [shape: f32[8,32], index: 4, kind: input, shape index: {}]   ;;  %s610_s5 = inlined_call_operand.vmem [shape: f32[32,2], index: 5, kind: input, shape index: {}]   ;;  %s611_s6 = inlined_call_operand.hbm [shape: f32[1,128], index: 6, kind: output, shape index: {}]  }
   0x1   :  { %v29_v0 = vld [vmem:[%s610_s5] sm:$0xff]  ;;  %v30_v1 = vld [vmem:[%s610_s5 + $0x8] sm:$0xff]  ;;  %v31_v2 = vld [vmem:[%s610_s5 + $0x10] sm:$0xff]  ;;  %469 = vmatprep.subr.bf16.mxu0 %v514_v3  ;;  %451 = vmatprep.mubr.msk.f32.mxu0 %vm515_vm0, %v516_v6 }
   0x2   :  { %v470_v4 = vpack.c.bf16 %v30_v1, %v29_v0  ;;  %v32_v5 = vld [vmem:[%s610_s5 + $0x18] sm:$0xff]  ;;  %v142_v7 = vld [vmem:[%s608_s3] sm:$0xff]  ;;  %483 = vset.pattern.permute.xlu0 %v517_v8  ;;  %485 = vset.pattern.permute.xlu1 %v517_v8 }
   0x3   :  { %12 = vsyncpa [#allocation4], 0  ;;  %v473_v9 = vpack.c.bf16 %v32_v5, %v31_v2  ;;  %146 = vperm.xlu0 %483, %v142_v7   ;;  %454 = vmatprep.subr.mxu1 %v516_v6  ;;  %v28_v10 = vld [vmem:[%s609_s4] sm:$0xff]  ;;  %vm33_vm1 = vcmask 261120   ;;  %v518_v11 = vmov 1   ;;  %s519_s3 = smov 127   ;;  %v107_v14 = vlaneseq }
   0x4   :  { %471 = vmatpush3.bf16.msra.mxu0 %v470_v4  ;;  %456 = vmatprep.mubr.msk.f32.mxu1 %vm515_vm0, %v516_v6  ;;  %vm160_vm3 = vcmask 64512   ;;  %v424_v26 = vld [vmem:[%s606_s1] ss:$0 sm:$0xff]  ;;  %v322_v38 = vstv %s605_s0  ;;  %v520_v48 = vmov 1.0   ;;  %s521_s0 = smov [#allocation3]  }
   0x5   :  { %472 = vmatprep.subr.bf16.mxu0 %v514_v3  ;;  %v144_v15 = vand.u32 127, %v107_v14  ;;  %v108_v25 = vshrl.u32 %v107_v14, 7  ;;  %v425_v37 = vld [vmem:[%s607_s2] ss:$0 sm:$0xff]  ;;  %s415_s1 = sshll.u32 %s521_s0, 4  ;;  %s416_s1 = int_to_ptr.vmem [resolvable:$true] %s415_s1 }
   0x6   :  { %s490_s2 = scalar_lea.vmem %s416_s1, 16  ;;  %s494_s13 = scalar_lea.vmem %s416_s1, 32 }
   0x7   :  { %484 = vset.pattern.permute.xlu0 %v518_v11  ;;  %vm113_vm5 = vcmp.eq.s32.totalorder %v108_v25, %v424_v26  ;;  %vm130_vm7 = vcmp.eq.s32.totalorder %v108_v25, %v425_v37  ;;  %p491_p0 = scmp.ne.s32.totalorder %s416_s1, %s490_s2  ;;  %p495_p1 = scmp.lt.s32.totalorder %s416_s1, %s416_s1 }
   0x8   :  { %474 = vmatpush3.bf16.msra.mxu0 %v473_v9  ;;  %152 = vperm.xlu0 %484, %v142_v7   ;;  %p496_p2 = scmp.lt.s32.totalorder %s494_s13, %s490_s2 }
   0xa   :  { %p497_p3 = por %p496_p2, %p495_p1 }
   0xb   :  { %452 = vmatmul.mubr.msk.f32.vlgmr.msra.gmra.mrb[0].mxu0 %vm33_vm1, %v28_v10 }
   0xc   :  { %486 = vset.pattern.permute.xlu0 %v517_v8  ;;  %p498_p4 = pnand %p497_p3, %p491_p0 }
  0x82   :  { %v147_v16 = vpop.permute.xlu0 %146 }
  0x83   :  { %vm148_vm2 = vcmp.eq.s32.totalorder %v144_v15, %v147_v16  ;;  %vm307_vm6 = vcmp.eq.s32.totalorder %v147_v16, %v424_v26 }
  0x84   :  { %v426_v17 = vsel %vm148_vm2, 1.0, %v516_v6 }
  0x87   :  { %v153_v18 = vpop.permute.xlu0 %152 }
  0x88   :  { %vm154_vm4 = vcmp.eq.s32.totalorder %v144_v15, %v153_v18  ;;  %vm308_vm8 = vcmp.eq.s32.totalorder %v153_v18, %v424_v26 }
  0x89   :  { %v427_v20 = vsel %vm154_vm4, 1.0, %v516_v6  ;;  %vm309_vm10 = vmor %vm307_vm6, %vm308_vm8 }
  0xde   :  { %v103_v12 = vpop.f32.mrb[0].mxu0 }
  0xdf   :  { %157 = vrot.lane.b32.xlu1 %v103_v12, %s519_s3  ;;  %v453_v13 = vpop.f32.mrb[1].mxu0 }
  0xe3   :  { %116 = vperm.xlu1 %485, %v103_v12  }
 0x151   :  { %v158_v19 = vpop.permute.xlu1 %157 }
 0x152   :  { %455 = vmatpush3.msra.mxu1 %v158_v19 }
 0x153   :  { %457 = vmatmul.mubr.msk.f32.vlgmr.msra.gmra.mrb[0].mxu1 %vm160_vm3, %v426_v17  ;;  %459 = vmatprep.subr.mxu1 %v516_v6 }
 0x154   :  { %460 = vmatpush3.msra.mxu1 %v158_v19  ;;  %461 = vmatprep.mubr.msk.f32.mxu1 %vm515_vm0, %v516_v6 }
 0x155   :  { %464 = vmatprep.subr.mxu1 %v516_v6 }
 0x157   :  { %462 = vmatmul.mubr.msk.f32.vlgmr.msra.gmra.mrb[2].mxu1 %vm160_vm3, %v427_v20 }
 0x158   :  { %466 = vmatprep.mubr.msk.f32.mxu1 %vm515_vm0, %v516_v6 }
 0x162   :  { %v117_v27 = vpop.permute.xlu1 %116 }
 0x163   :  { %v119_v28 = vsel %vm113_vm5, %v117_v27, 0.0 }
 0x164   :  { %v120_v29 = vrot.slane %v119_v28, 4 }
 0x166   :  { %v121_v30 = vadd.f32 %v120_v29, %v119_v28 }
 0x168   :  { %v122_v31 = vrot.slane %v121_v30, 2 }
 0x16a   :  { %v123_v32 = vadd.f32 %v122_v31, %v121_v30 }
 0x16c   :  { %v124_v33 = vrot.slane %v123_v32, 1 }
 0x16e   :  { %v125_v36 = vadd.f32 %v124_v33, %v123_v32 }
 0x226   :  { %v230_v21 = vpop.f32.mrb[0].mxu1 }
 0x227   :  { %317 = vperm.xlu0 %486, %v230_v21   ;;  %v458_v22 = vpop.f32.mrb[1].mxu1 }
 0x22a   :  { %v303_v23 = vpop.f32.mrb[2].mxu1 }
 0x22b   :  { %312 = vperm.xlu1 %485, %v303_v23   ;;  %v463_v24 = vpop.f32.mrb[3].mxu1 }
 0x22f   :  { %487 = vset.pattern.permute.xlu1 %v518_v11 }
 0x230   :  { %132 = vperm.xlu1 %487, %v103_v12  }
 0x2a6   :  { %v318_v34 = vpop.permute.xlu0 %317 }
 0x2aa   :  { %v313_v35 = vpop.permute.xlu1 %312 }
 0x2ab   :  { %v320_v39 = vsel %vm307_vm6, %v313_v35, %v318_v34 }
 0x2ac   :  { %v321_v40 = vadd.f32 %v320_v39, %v125_v36 }
 0x2ae   :  { %v323_v41 = vadd.f32 %v322_v38, %v321_v40 }
 0x2af   :  { %v133_v42 = vpop.permute.xlu1 %132 }
 0x2b0   :  { %v325_v43 = vmul.f32 0.2, %v323_v41  ;;  %v135_v44 = vsel %vm130_vm7, %v133_v42, 0.0  ;;  %vm324_vm9 = vcmp.ge.f32.partialorder %v323_v41, 0.0 }
 0x2b1   :  { %v136_v45 = vrot.slane %v135_v44, 4 }
 0x2b2   :  { %v326_v46 = vsel %vm324_vm9, %v323_v41, %v325_v43 }
 0x2b3   :  { %v137_v47 = vadd.f32 %v136_v45, %v135_v44  ;;  %465 = vmatpush3.msk.msra.mxu1 %vm309_vm10, %v326_v46 }
 0x2b4   :  { %467 = vmatmul.mubr.msk.f32.vlgmr.msra.gmra.mrb[4].mxu1 %vm160_vm3, %v520_v48 }
 0x2b5   :  { %v138_v49 = vrot.slane %v137_v47, 2 }
 0x2b7   :  { %v139_v50 = vadd.f32 %v138_v49, %v137_v47 }
 0x2b9   :  { %v140_v51 = vrot.slane %v139_v50, 1 }
 0x2bb   :  { %v141_v52 = vadd.f32 %v140_v51, %v139_v50 }
 0x2bd   :  { %v401_v53 = vadd.f32 %v141_v52, %v125_v36 }
 0x2bf   :  { %v402_v54 = vadd.f32 %v401_v53, %v322_v38 }
 0x2c1   :  { %v404_v57 = vmul.f32 0.2, %v402_v54  ;;  %vm403_vm11 = vcmp.ge.f32.partialorder %v402_v54, 0.0 }
 0x2c3   :  { %v405_v59 = vsel %vm403_vm11, %v402_v54, %v404_v57 }
 0x387   :  { %v397_v55 = vpop.f32.mrb[4].mxu1 }
 0x388   :  { %488 = vrcp.f32 %v397_v55  ;;  %v468_v56 = vpop.f32.mrb[5].mxu1 }
 0x392   :  { %v489_v58 = vpop.eup %488 }
 0x393   :  { %v407_v60 = vmul.f32 %v489_v58, %v405_v59 }
 0x395   :  { %408 = vst [vmem:[#allocation3] sm:$0x1] %v407_v60 }
 0x396   :  { %501 = shalt.err (!%p498_p4)
}
 0x397   :  { %s502_s16 = scalar_lea.hbm %s611_s6, 16 }
 0x398   :  { %p503_p5 = scmp.ne.s32.totalorder %s611_s6, %s502_s16  ;;  %p506_p6 = scmp.lt.u32.totalorder %s502_s16, %s611_s6 }
 0x39a   :  { %p508_p7 = pnand %p506_p6, %p503_p5 }
 0x39c   :  { %511 = shalt.err (!%p508_p7)
}
 0x39d   :  { %418 = dma.vmem_to_hbm [thread:$0]  %s416_s1, 16, %s611_s6, [#allocation4]  }
 0x39e   :  { %512 = dma.done.wait [#allocation4], 16  }
 0x39f   :  { %513 = vsyncadd [#allocation4], 4294967280 }
 0x3a0   :  { %422 = vsyncpa [#allocation4], 1 }

</bundles_post_ra>
